<compile_context>
chip_gen: v6e
topology: v6e:2x2x1
jax: 0.10.0
libtpu: 0.0.40
codegen_flags: <defaults>
</compile_context>

<pallas_src>
import inspect

import jax
import jax.numpy as jnp
from jax.experimental import pallas as pl
from jax.experimental.pallas import tpu as pltpu


_SUPPORTS_BUFFERED = (
    hasattr(pl, "Buffered")
    and "pipeline_mode" in inspect.signature(pl.BlockSpec).parameters
)


def _round_up(n, m):
    return ((n + m - 1) // m) * m


def single_modulation_kernel(x_ref, w_ref, b_ref, o_ref):
    # x_ref: (tm, D)   w_ref: (D, tn)   b_ref: (1, 1, tn) f32   o_ref: (1, tm, tn)
    x = x_ref[...].astype(jnp.float32)
    h = x * jax.nn.sigmoid(x)                     # SiLU in f32 (EUP path)
    acc = jnp.dot(h.astype(w_ref.dtype), w_ref[...],
                  preferred_element_type=jnp.float32)
    o_ref[...] = (acc[None, :, :] + b_ref[...]).astype(o_ref.dtype)


def _pick_tn(dim_pad, d, itemsize):
    """Largest multiple-of-128 divisor of dim_pad whose double-buffered (D, tn)
    weight block stays under ~6 MiB (fits the v5e 16 MiB scoped default with
    headroom for the x / out / bias buffers)."""
    budget = 6 * 1024 * 1024
    best = 128
    t = 128
    while t <= min(dim_pad, 1024):
        if dim_pad % t == 0 and 2 * d * t * itemsize <= budget:
            best = t
        t += 128
    return best


def single_modulation(vec, weight_t, bias):
    """vec: [M, dim]; weight_t: [dim, 3*dim] (transposed nn.Linear weight);
    bias: [3*dim].  Returns (m0, m1, m2), each [M, 1, dim]."""
    M, D = vec.shape
    d_in, N = weight_t.shape
    assert d_in == D and N == 3 * D and bias.shape == (N,)
    dim = D

    # --- column (output-feature) tiling: pad each chunk to a lane multiple ---
    dim_pad = _round_up(dim, 128)
    if dim_pad != dim:
        w = jnp.pad(weight_t.reshape(D, 3, dim),
                    ((0, 0), (0, 0), (0, dim_pad - dim))).reshape(D, 3 * dim_pad)
        b3 = jnp.pad(bias.reshape(3, 1, dim),
                     ((0, 0), (0, 0), (0, dim_pad - dim)))
    else:
        w = weight_t
        b3 = bias.reshape(3, 1, dim)
    b3 = b3.astype(jnp.float32)

    tn = _pick_tn(dim_pad, D, jnp.dtype(w.dtype).itemsize)
    n_j = dim_pad // tn

    # --- row tiling: keep a single un-padded block for typical small batches --
    if M <= 256:
        tm, M_pad = M, M
    else:
        tm = 256
        M_pad = _round_up(M, tm)
    mt = M_pad // tm
    x = vec if M_pad == M else jnp.pad(vec, ((0, M_pad - M), (0, 0)))

    # --- block specs ---------------------------------------------------------
    # grid = (chunk, column tile, row tile); the row axis is innermost so each
    # weight block is fetched exactly once; chunk/column axes lead so megacore
    # parallelism splits the weight columns (disjoint halves per core).
    x_kwargs = {}
    if mt == 1:
        x_index = lambda c, j, i: (0, 0)          # truly grid-invariant
        if _SUPPORTS_BUFFERED:
            x_kwargs["pipeline_mode"] = pl.Buffered(1)
    else:
        x_index = lambda c, j, i: (i, 0)
    x_spec = pl.BlockSpec((tm, D), x_index, **x_kwargs)
    w_spec = pl.BlockSpec((D, tn), lambda c, j, i: (0, c * n_j + j))
    b_spec = pl.BlockSpec((1, 1, tn), lambda c, j, i: (c, 0, j))
    o_spec = pl.BlockSpec((1, tm, tn), lambda c, j, i: (c, i, j))

    cost = pl.CostEstimate(
        flops=2 * M_pad * D * 3 * dim_pad,
        transcendentals=M_pad * D * 3 * n_j,      # SiLU recomputed per column tile
        bytes_accessed=(x.size * x.dtype.itemsize
                        + w.size * w.dtype.itemsize            # weight read once
                        + b3.size * b3.dtype.itemsize
                        + 3 * M_pad * dim_pad * vec.dtype.itemsize),
    )

    out = pl.pallas_call(
        single_modulation_kernel,
        out_shape=jax.ShapeDtypeStruct((3, M_pad, dim_pad), vec.dtype),
        grid_spec=pltpu.PrefetchScalarGridSpec(
            num_scalar_prefetch=0,
            grid=(3, n_j, mt),
            in_specs=[x_spec, w_spec, b_spec],
            out_specs=o_spec,
        ),
        compiler_params=pltpu.CompilerParams(
            dimension_semantics=("parallel", "parallel", "parallel"),
            vmem_limit_bytes=32 * 1024 * 1024,    # <= physical VMEM on every chip
        ),
        cost_estimate=cost,
    )(x, w, b3)

    def chunk(c):
        r = out[c]
        if M_pad != M or dim_pad != dim:
            r = r[:M, :dim]
        return r[:, None, :]                      # [M, 1, dim]

    return chunk(0), chunk(1), chunk(2)


def single_modulation_ref(vec, weight_t, bias):
    # Mirrors the kernel's dtype handling (f32 SiLU, f32 accumulation).
    h = jax.nn.silu(vec.astype(jnp.float32))
    out = jnp.dot(h.astype(weight_t.dtype), weight_t,
                  preferred_element_type=jnp.float32) + bias.astype(jnp.float32)
    out = out.astype(vec.dtype)[:, None, :]
    d = out.shape[-1] // 3
    return out[..., :d], out[..., d:2 * d], out[..., 2 * d:]


if __name__ == "__main__":
    key = jax.random.PRNGKey(0)

    def run_case(idx, batch, dim, dtype, atol, rtol):
        kx, kw, kb = jax.random.split(jax.random.fold_in(key, idx), 3)
        N = 3 * dim
        vec = jax.random.normal(kx, (batch, dim), dtype=jnp.float32)
        # nn.Linear stores weight as [out, in]; we keep the transposed [in, out].
        w = jax.random.normal(kw, (dim, N), dtype=jnp.float32) * (dim ** -0.5)
        b = jax.random.normal(kb, (N,), dtype=jnp.float32) * 0.01
        vec = vec.astype(dtype)
        w = w.astype(dtype)

        out = jax.block_until_ready(single_modulation(vec, w, b))
        ref = single_modulation_ref(vec, w, b)
        for o, r in zip(out, ref):
            assert o.shape == (batch, 1, dim), (o.shape, (batch, 1, dim))
            assert jnp.allclose(o.astype(jnp.float32), r.astype(jnp.float32),
                                atol=atol, rtol=rtol), f"mismatch in case {idx}"

    # f32 path, dim multiple of 128.
    run_case(0, 8, 256, jnp.float32, 1e-4, 1e-4)
    # bf16 weights/activations (f32 MXU accumulation inside the kernel).
    run_case(1, 8, 256, jnp.bfloat16, 2e-2, 2e-2)
    # ragged dim (not a multiple of 128): exercises per-chunk column padding.
    run_case(2, 5, 192, jnp.float32, 1e-4, 1e-4)

    print("KERNEL_OK")
</pallas_src>

<mosaic_0001>
module attributes {stable_mosaic.version = 11 : i64} {
  func.func @single_modulation_kernel(%arg0: i32, %arg1: i32, %arg2: i32, %arg3: memref<8x256xf32, #tpu.memory_space<vmem>>, %arg4: memref<256x256xf32, #tpu.memory_space<vmem>>, %arg5: memref<1x1x256xf32, #tpu.memory_space<vmem>>, %arg6: memref<1x8x256xf32, #tpu.memory_space<vmem>>) attributes {dimension_semantics = [#tpu.dimension_semantics<parallel>, #tpu.dimension_semantics<parallel>, #tpu.dimension_semantics<parallel>], iteration_bounds = array<i64: 3, 1, 1>, scalar_prefetch = 0 : i64, scratch_operands = 0 : i64, tpu.core_type = #tpu.core_type<tc>, window_params = [{pipeline_mode = #tpu.pipeline_mode<synchronous>, transform_indices = @transform_0, window_bounds = array<i64: 8, 256>}, {transform_indices = @transform_1, window_bounds = array<i64: 256, 256>}, {transform_indices = @transform_2, window_bounds = array<i64: 1, 1, 256>}, {transform_indices = @transform_3, window_bounds = array<i64: 1, 8, 256>}]} {
    %c0 = arith.constant 0 : index
    %c0_0 = arith.constant 0 : index
    %0 = vector.load %arg3[%c0, %c0_0] : memref<8x256xf32, #tpu.memory_space<vmem>>, vector<8x256xf32>
    %1 = arith.negf %0 : vector<8x256xf32>
    %2 = math.exp %1 : vector<8x256xf32>
    %cst = arith.constant 1.000000e+00 : f32
    %3 = vector.broadcast %cst : f32 to vector<8x256xf32>
    %4 = arith.addf %3, %2 : vector<8x256xf32>
    %5 = arith.divf %3, %4 : vector<8x256xf32>
    %6 = arith.mulf %0, %5 : vector<8x256xf32>
    %c0_1 = arith.constant 0 : index
    %c0_2 = arith.constant 0 : index
    %7 = vector.load %arg4[%c0_1, %c0_2] : memref<256x256xf32, #tpu.memory_space<vmem>>, vector<256x256xf32>
    %cst_3 = arith.constant dense<0.000000e+00> : vector<8x256xf32>
    %8 = tpu.matmul %6, %7, %cst_3 {dimension_numbers = #tpu.dot_dimension_numbers<[1], [0], [0], [1], [0, 0, 1, 1], [], []>} : vector<8x256xf32>, vector<256x256xf32>, vector<8x256xf32> -> vector<8x256xf32>
    %9 = vector.shape_cast %8 : vector<8x256xf32> to vector<1x8x256xf32>
    %c0_4 = arith.constant 0 : index
    %c0_5 = arith.constant 0 : index
    %c0_6 = arith.constant 0 : index
    %10 = vector.load %arg5[%c0_4, %c0_5, %c0_6] : memref<1x1x256xf32, #tpu.memory_space<vmem>>, vector<1x1x256xf32>
    %11 = vector.broadcast %10 : vector<1x1x256xf32> to vector<1x8x256xf32>
    %12 = arith.addf %9, %11 : vector<1x8x256xf32>
    %c0_7 = arith.constant 0 : index
    %c0_8 = arith.constant 0 : index
    %c0_9 = arith.constant 0 : index
    %13 = vector.load %arg6[%c0_7, %c0_8, %c0_9] : memref<1x8x256xf32, #tpu.memory_space<vmem>>, vector<1x8x256xf32>
    tpu.vector_store %arg6[%c0_7, %c0_8, %c0_9], %12 {strides = array<i32>} : memref<1x8x256xf32, #tpu.memory_space<vmem>>, vector<1x8x256xf32>,
    return
  }
  func.func @transform_0(%arg0: i32, %arg1: i32, %arg2: i32) -> (i32, i32) {
    %c0_i32 = arith.constant 0 : i32
    %c0_i32_0 = arith.constant 0 : i32
    %c0_i32_1 = arith.constant 0 : i32
    return %c0_i32, %c0_i32_0 : i32, i32
  }
  func.func @transform_1(%arg0: i32, %arg1: i32, %arg2: i32) -> (i32, i32) {
    %c1_i32 = arith.constant 1 : i32
    %0 = arith.muli %arg0, %c1_i32 : i32
    %1 = arith.addi %0, %arg1 : i32
    %c0_i32 = arith.constant 0 : i32
    %c0_i32_0 = arith.constant 0 : i32
    return %c0_i32, %1 : i32, i32
  }
  func.func @transform_2(%arg0: i32, %arg1: i32, %arg2: i32) -> (i32, i32, i32) {
    %c0_i32 = arith.constant 0 : i32
    %c0_i32_0 = arith.constant 0 : i32
    return %arg0, %c0_i32, %arg1 : i32, i32, i32
  }
  func.func @transform_3(%arg0: i32, %arg1: i32, %arg2: i32) -> (i32, i32, i32) {
    %c0_i32 = arith.constant 0 : i32
    return %arg0, %arg2, %arg1 : i32, i32, i32
  }
}

</mosaic_0001>

<bundles_post_ra>
// kernel: tpu_custom_call.1
= control target key start
LH: loop header
LB: loop body
LE: loop exit
PB: predicated region body
PF: predicated region fallthrough
CT: control target
= control target key end

     0   :  { %s1152_s0 = inlined_call_operand.hbm [shape: f32[8,256], index: 0, kind: input, shape index: {}]   ;;  %s1153_s1 = inlined_call_operand.hbm [shape: f32[256,768], index: 1, kind: input, shape index: {}]   ;;  %s1154_s2 = inlined_call_operand.hbm [shape: f32[3,1,256], index: 2, kind: input, shape index: {}]   ;;  %s1155_s3 = inlined_call_operand.hbm [shape: f32[3,8,256], index: 3, kind: output, shape index: {}]  }
   0x1   :  { %1159 = sst [smem:[#allocation12_spill]] %s1153_s1 }
   0x2   :  { %8 = vsyncpa [#allocation3], 0 }
   0x3   :  { %9 = vsyncpa [#allocation6], 0 }
   0x4   :  { %11 = vsyncpa [#allocation6 + $0x1], 0 }
   0x5   :  { %12 = vsyncpa [#allocation4], 0 }
   0x6   :  { %14 = vsyncpa [#allocation4 + $0x1], 0  ;;  %s889_s12 = smov 0   ;;  %s891_s13 = smov 0  }
   0x7   :  { %s893_s14 = smov 0   ;;  %s895_s15 = smov 0  }
   0x8   :  { %s897_s16 = smov 0   ;;  %s899_s17 = smov 0  }
   0x9 LB: > { %s39_s18 = sadd.s32 1, %s856_s16  ;;  %s69_s19 = sadd.s32 1, %s848_s14  ;;  %s860_s17 = sphi %s899_s17, %s20_s17   ;;  %s856_s16 = sphi %s897_s16, %s1176_s16   ;;  %s852_s15 = sphi %s895_s15, %s1175_s15   ;;  %s848_s14 = sphi %s893_s14, %s1174_s14   ;;  %s844_s13 = sphi %s891_s13, %s1173_s13   ;;  %s840_s12 = sphi %s889_s12, %s1172_s12  }
   0xa   : > { %p41_p0 = scmp.ge.s32.totalorder %s39_s18, 3  ;;  %p76_p1 = scmp.ne.s32.totalorder %s848_s14, %s844_s13 }
   0xb   : > { %p77_p2 = scmp.eq.s32.totalorder %s860_s17, 0  ;;  %p631_p4 = scmp.lt.s32.totalorder %s860_s17, 3 }
   0xc   : > { %s1178_s18 = smov (%p41_p0, %s39_s18), 0  ;;  %s175_s21 = sand.u32 1, %s860_s17  }
   0xd   : > { %p78_p3 = por %p77_p2, %p76_p1  ;;  %s66_s20 = ssub.s32 %s856_s16, %s1178_s18 }
   0xe   : > { %p67_p5 = scmp.eq.s32.totalorder %s66_s20, 0  ;;  %s177_s22 = sand.u32 1, %s848_s14  }
   0xf   : > { %s602_s23 = sshll.u32 %s856_s16, 8  ;;  %s584_s25 = sshll.u32 %s177_s22, 9 }
  0x10   : > { %s936_s24 = scalar_select %p67_p5, %s848_s14, %s69_s19  }
  0x11   : > { %s1160_s1 = sld [smem:[#allocation12_spill]]  ;;  %p943_p6 = pnand %p631_p4, %p78_p3 }
  0x12   : > { %s179_s30 = scalar_lea.vmem [#allocation5], %s584_s25  ;;  %s947_s5 = scalar_lea.sflag [#allocation6], %s175_s21 }
  0x13   : > { %s187_s4 = sshll.u32 %s179_s30, 4  ;;  %p696_p7 = pneg %p943_p6  ;;  %s188_s4 = int_to_ptr.vmem [resolvable:$true] %s187_s4 }
  0x14   : > { %s707_s6 = scalar_lea.vmem %s188_s4, 8192  ;;  %s862_s7 = smov [#allocation5]  }
  0x15   : > { %p708_p8 = scmp.ne.s32.totalorder %s188_s4, %s707_s6  ;;  %s712_s8 = sshll.u32 %s862_s7, 4  ;;  %s713_s8 = int_to_ptr.vmem [resolvable:$false] %s712_s8 }
  0x16   : > { %s714_s9 = scalar_lea.vmem %s713_s8, 16384  ;;  %p715_p11 = scmp.lt.s32.totalorder %s188_s4, %s713_s8 }
  0x17   : > { %s186_s28 = scalar_lea.hbm %s1160_s1, %s602_s23  ;;  %p710_p9 = pnand %p708_p8, %p696_p7 }
  0x18   : > { %p716_p12 = scmp.lt.s32.totalorder %s714_s9, %s707_s6 }
  0x19   : > { %p711_p10 = pneg %p710_p9 }
  0x1a   : > { %p717_p13 = por %p716_p12, %p715_p11 }
  0x1c   : > { %p718_p0 = pnand %p717_p13, %p711_p10 }
  0x1e   : > { %721 = shalt.err (!%p718_p0)
}
  0x1f   : > { %s863_s10 = smov 768   ;;  %s864_s11 = smov 256  }
  0x20   : > { %s865_s19 = smov 16   ;;  %s958_s20 = sadd.s32 4294967295, %s860_s17  }
  0x21   : > { %622 = dma.hbm_to_vmem [thread:$0]  (!%p943_p6), %s186_s28, 8192, %s188_s4, %s947_s5, %s863_s10, %s864_s11, %s865_s19  }
  0x22   : > { %s580_s21 = sadd.s32 4294967294, %s860_s17   ;;  %p82_p2 = scmp.ne.s32.totalorder %s844_s13, %s840_s12 }
  0x23   : > { %p1157_p3 = scmp.eq.s32.totalorder %s958_s20, 0  ;;  %p138_p4 = scmp.eq.s32.totalorder %s958_s20, 2 }
  0x24   : > { %p144_p5 = scmp.eq.s32.totalorder %s580_s21, 2  ;;  %p581_p9 = scmp.ge.s32.totalorder %s860_s17, 1 }
  0x25   : > { %p967_p8 = por %p1157_p3, %p82_p2  ;;  %p975_p10 = por %p138_p4, %p76_p1 }
  0x26   : > { %p979_p11 = por %p144_p5, %p82_p2  ;;  %p151_p12 = scmp.lt.s32.totalorder %s860_s17, 4 }
  0x27   : > { %s1162_s23 = scalar_select %p967_p8, 1, 0 }
  0x28   : > { %s1163_s25 = scalar_select %p975_p10, 1, 0 }
  0x29   : > { %s1164_s26 = scalar_select %p979_p11, 1, 0 }
  0x2a   : > { %s587_s27 = sshll.u32 %s177_s22, 1  ;;  %p986_p13 = pnand %p581_p9, %p151_p12 }
  0x2b   : > { %s866_s30 = smov [#allocation2]   ;;  %s603_s6 = sshll.u32 %s856_s16, 5 }
  0x2c   : > { %s164_s4 = sshll.u32 %s866_s30, 4  ;;  %p615_p1 = pneg %p986_p13  ;;  %s990_s4 = int_to_ptr.vmem [resolvable:$true] %s164_s4 }
  0x2d   : > { %s209_s9 = scalar_lea.hbm %s1154_s2, %s603_s6  ;;  %s201_s10 = scalar_lea.vmem [#allocation7], %s587_s27 }
  0x2e   : > { %s211_s11 = sshll.u32 %s201_s10, 4  ;;  %p1000_p0 = pnand %p615_p1, %p1157_p3  ;;  %s212_s11 = int_to_ptr.vmem [resolvable:$true] %s211_s11 }
  0x2f   : > { %s735_s19 = scalar_lea.vmem %s212_s11, 32  ;;  %s867_s21 = smov [#allocation7]  }
  0x30   : > { %p736_p2 = scmp.ne.s32.totalorder %s212_s11, %s735_s19  ;;  %s740_s30 = sshll.u32 %s867_s21, 4  ;;  %s741_s30 = int_to_ptr.vmem [resolvable:$false] %s740_s30 }
  0x31   : > { %s742_s1 = scalar_lea.vmem %s741_s30, 64  ;;  %p743_p9 = scmp.lt.s32.totalorder %s212_s11, %s741_s30 }
  0x32   : > { %p738_p4 = pnand %p736_p2, %p696_p7  ;;  %p744_p12 = scmp.lt.s32.totalorder %s742_s1, %s735_s19 }
  0x34   : > { %p739_p5 = pneg %p738_p4  ;;  %p745_p11 = por %p744_p12, %p743_p9 }
  0x36   : > { %p746_p10 = pnand %p745_p11, %p739_p5 }
  0x38   : > { %749 = shalt.err (!%p746_p10)
}
  0x39   : > { %625 = dma.hbm_to_vmem [thread:$0]  (!%p943_p6), %s209_s9, 32, %s212_s11, %s947_s5  }
  0x3a   : > { %p752_p7 = pneg %p1000_p0  ;;  %s761_s27 = scalar_lea.vmem %s990_s4, 256 }
  0x3b   : > { %p762_p1 = scmp.ne.s32.totalorder %s990_s4, %s761_s27  ;;  %p769_p3 = scmp.lt.s32.totalorder %s990_s4, %s990_s4 }
  0x3c   : > { %p770_p8 = scmp.lt.s32.totalorder %s761_s27, %s761_s27 }
  0x3d   : > { %p764_p2 = pnand %p762_p1, %p752_p7 }
  0x3e   : > { %p771_p9 = por %p770_p8, %p769_p3 }
  0x3f   : > { %p765_p4 = pneg %p764_p2 }
  0x41   : > { %p772_p11 = pnand %p771_p9, %p765_p4 }
  0x43   : > { %775 = shalt.err (!%p772_p11)
}
  0x44   : > { %618 = dma.hbm_to_vmem [thread:$0]  (!%p1000_p0), %s1152_s0, 256, %s990_s4, [#allocation3]  }
  0x45   : > { %220 = sbr.rel (%p986_p13) target bundleno = 355 (0x163), region = 32  ;;  %p1167_p6 = scmp.eq.s32.totalorder (!%p986_p13), %s958_s20, 0 }
  0x4a   : > { %827 = dma.done.wait (%p1167_p6), [#allocation3], 256   ;;  %p1168_p10 = pmov %p1167_p6 }
  0x4b   : > { %s226_s5 = sand.u32 1, %s958_s20   ;;  %s1030_s6 = sand.u32 1, %s844_s13  }
  0x4c   : > { %829 = vsyncadd (%p1168_p10), [#allocation3], 4294967040  ;;  %s592_s7 = sshll.u32 %s1030_s6, 9  ;;  %s227_s8 = scalar_lea.sflag [#allocation6], %s226_s5 }
  0x4d   : > { %s1033_s9 = scalar_lea.vmem [#allocation5], %s592_s7  ;;  %p1169_p3 = scmp.ne.s32.totalorder %s1162_s23, 0 }
  0x4f   : > { %831 = dma.done.wait (%p1169_p3), %s227_s8, 8224  }
  0x50   : > { %833 = vsyncadd (%p1169_p3), %s227_s8, 4294959072  ;;  %v318_v0 = vld [vmem:[%s1033_s9 + $0xf8] sm:$0xff]  ;;  %v317_v1 = vld [vmem:[%s1033_s9 + $0xf0] sm:$0xff]  ;;  %s593_s20 = sshll.u32 %s1030_s6, 1  ;;  %s594_s23 = sshll.u32 %s1030_s6, 4 }
  0x51   : > { %v316_v2 = vld [vmem:[%s1033_s9 + $0xe8] sm:$0xff]  ;;  %351 = vmatprep.subr.mxu0 %v318_v0  ;;  %v315_v3 = vld [vmem:[%s1033_s9 + $0xe0] sm:$0xff]  ;;  %v314_v4 = vld [vmem:[%s1033_s9 + $0xd8] sm:$0xff]  ;;  %s239_s28 = scalar_lea.vmem [#allocation7], %s593_s20  ;;  %s604_s4 = sshll.u32 %s852_s15, 8 }
  0x52   : > { %352 = vmatpush1.msra.mxu0 %v317_v1  ;;  %v313_v5 = vld [vmem:[%s1033_s9 + $0xd0] sm:$0xff]  ;;  %v312_v6 = vld [vmem:[%s1033_s9 + $0xc8] sm:$0xff]  ;;  %v311_v7 = vld [vmem:[%s1033_s9 + $0xc0] sm:$0xff]  ;;  %s266_s10 = scalar_lea.vmem [#allocation8], %s594_s23  ;;  %s455_s21 = scalar_lea.hbm %s1155_s3, %s604_s4 }
  0x53   : > { %353 = vmatprep.subr.mxu0 %v316_v2  ;;  %v310_v8 = vld [vmem:[%s1033_s9 + $0xb8] sm:$0xff]  ;;  %v309_v9 = vld [vmem:[%s1033_s9 + $0xb0] sm:$0xff]  ;;  %v308_v10 = vld [vmem:[%s1033_s9 + $0xa8] sm:$0xff]  ;;  %s457_s11 = sshll.u32 %s266_s10, 4  ;;  %s439_s30 = scalar_lea.sflag [#allocation4], %s1030_s6  ;;  %s458_s11 = int_to_ptr.vmem [resolvable:$true] %s457_s11 }
  0x54   : > { %354 = vmatpush1.msra.mxu0 %v315_v3  ;;  %v307_v11 = vld [vmem:[%s1033_s9 + $0xa0] sm:$0xff]  ;;  %v306_v12 = vld [vmem:[%s1033_s9 + $0x98] sm:$0xff]  ;;  %v305_v13 = vld [vmem:[%s1033_s9 + $0x90] sm:$0xff]  ;;  %s776_s27 = scalar_lea.vmem %s458_s11, 256  ;;  %p1170_p13 = scmp.ne.s32.totalorder %s1163_s25, 0 }
  0x55   : > { %355 = vmatprep.subr.mxu0 %v314_v4  ;;  %v304_v14 = vld [vmem:[%s1033_s9 + $0x88] sm:$0xff]  ;;  %v303_v15 = vld [vmem:[%s1033_s9 + $0x80] sm:$0xff]  ;;  %v302_v16 = vld [vmem:[%s1033_s9 + $0x78] sm:$0xff]  ;;  %p777_p8 = scmp.ne.s32.totalorder %s458_s11, %s776_s27  ;;  %s868_s1 = smov [#allocation8]  }
  0x56   : > { %356 = vmatpush1.msra.mxu0 %v313_v5  ;;  %v301_v17 = vld [vmem:[%s1033_s9 + $0x70] sm:$0xff]  ;;  %v300_v18 = vld [vmem:[%s1033_s9 + $0x68] sm:$0xff]  ;;  %v299_v19 = vld [vmem:[%s1033_s9 + $0x60] sm:$0xff]  ;;  %s780_s15 = sshll.u32 %s868_s1, 4  ;;  %s781_s15 = int_to_ptr.vmem [resolvable:$false] %s780_s15 }
  0x57   : > { %357 = vmatprep.subr.mxu0 %v312_v6  ;;  %v298_v20 = vld [vmem:[%s1033_s9 + $0x58] sm:$0xff]  ;;  %v297_v21 = vld [vmem:[%s1033_s9 + $0x50] sm:$0xff]  ;;  %v296_v22 = vld [vmem:[%s1033_s9 + $0x48] sm:$0xff]  ;;  %p778_p0 = pnand %p777_p8, %p1170_p13  ;;  %s782_s29 = scalar_lea.vmem %s781_s15, 512 }
  0x58   : > { %358 = vmatpush1.msra.mxu0 %v311_v7  ;;  %v295_v23 = vld [vmem:[%s1033_s9 + $0x40] sm:$0xff]  ;;  %v1063_v24 = vld [vmem:[#allocation2 + $0x8] sm:$0xff]  ;;  %v1065_v25 = vld [vmem:[#allocation2] sm:$0xff]  ;;  %p783_p12 = scmp.lt.s32.totalorder %s458_s11, %s781_s15  ;;  %p784_p7 = scmp.lt.s32.totalorder %s782_s29, %s776_s27 }
  0x59   : > { %359 = vmatprep.subr.mxu0 %v310_v8  ;;  %v294_v26 = vld [vmem:[%s1033_s9 + $0x38] sm:$0xff]  ;;  %v596_v27 = vmul.f32 -1.442695, %v1063_v24  ;;  %v595_v28 = vmul.f32 -1.442695, %v1065_v25  ;;  %v293_v29 = vld [vmem:[%s1033_s9 + $0x30] sm:$0xff]  ;;  %p779_p5 = pneg %p778_p0 }
  0x5a   : > { %360 = vmatpush1.msra.mxu0 %v309_v9  ;;  %v292_v30 = vld [vmem:[%s1033_s9 + $0x28] sm:$0xff]  ;;  %v291_v31 = vld [vmem:[%s1033_s9 + $0x20] sm:$0xff]  ;;  %v290_v32 = vld [vmem:[%s1033_s9 + $0x18] sm:$0xff]  ;;  %p785_p1 = por %p784_p7, %p783_p12 }
  0x5b   : > { %361 = vmatprep.subr.mxu0 %v308_v10  ;;  %686 = vpow2.f32 %v596_v27  ;;  %v289_v33 = vld [vmem:[%s1033_s9 + $0x10] sm:$0xff]  ;;  %v288_v34 = vld [vmem:[%s1033_s9 + $0x8] sm:$0xff]  ;;  %v287_v35 = vld [vmem:[%s1033_s9] sm:$0xff] }
  0x5c   : > { %362 = vmatpush1.msra.mxu0 %v307_v11  ;;  %688 = vpow2.f32 %v595_v28  ;;  %v350_v36 = vld [vmem:[%s1033_s9 + $0x1f8] sm:$0xff]  ;;  %v349_v37 = vld [vmem:[%s1033_s9 + $0x1f0] sm:$0xff]  ;;  %v348_v38 = vld [vmem:[%s1033_s9 + $0x1e8] sm:$0xff]  ;;  %p786_p2 = pnand %p785_p1, %p779_p5 }
  0x5d   : > { %363 = vmatprep.subr.mxu0 %v306_v12  ;;  %v347_v39 = vld [vmem:[%s1033_s9 + $0x1e0] sm:$0xff]  ;;  %v346_v40 = vld [vmem:[%s1033_s9 + $0x1d8] sm:$0xff]  ;;  %v345_v41 = vld [vmem:[%s1033_s9 + $0x1d0] sm:$0xff]  ;;  %v424_v12 = vlaneseq }
  0x5e   : > { %364 = vmatpush1.msra.mxu0 %v305_v13  ;;  %v344_v42 = vld [vmem:[%s1033_s9 + $0x1c8] sm:$0xff]  ;;  %v343_v44 = vld [vmem:[%s1033_s9 + $0x1c0] sm:$0xff]  ;;  %v342_v46 = vld [vmem:[%s1033_s9 + $0x1b8] sm:$0xff] }
  0x5f   : > { %365 = vmatprep.subr.mxu0 %v304_v14  ;;  %v341_v48 = vld [vmem:[%s1033_s9 + $0x1b0] sm:$0xff]  ;;  %v340_v49 = vld [vmem:[%s1033_s9 + $0x1a8] sm:$0xff]  ;;  %v339_v50 = vld [vmem:[%s1033_s9 + $0x1a0] sm:$0xff]  ;;  %v425_v13 = vshrl.u32 %v424_v12, 7 }
  0x60   : > { %366 = vmatpush1.msra.mxu0 %v303_v15  ;;  %v338_v52 = vld [vmem:[%s1033_s9 + $0x198] sm:$0xff]  ;;  %v337_v53 = vld [vmem:[%s1033_s9 + $0x190] sm:$0xff]  ;;  %v336_v54 = vld [vmem:[%s1033_s9 + $0x188] sm:$0xff] }
  0x61   : > { %367 = vmatprep.subr.mxu0 %v302_v16  ;;  %v335_v55 = vld [vmem:[%s1033_s9 + $0x180] sm:$0xff]  ;;  %v334_v56 = vld [vmem:[%s1033_s9 + $0x178] sm:$0xff]  ;;  %v333_v57 = vld [vmem:[%s1033_s9 + $0x170] sm:$0xff]  ;;  %v426_v14 = vsub.s32 0, %v425_v13  ;;  %v430_v16 = vsub.s32 1, %v425_v13 }
  0x62   : > { %368 = vmatpush1.msra.mxu0 %v301_v17  ;;  %v332_v58 = vld [vmem:[%s1033_s9 + $0x168] sm:$0xff]  ;;  %v331_v59 = vld [vmem:[%s1033_s9 + $0x160] sm:$0xff]  ;;  %v330_v60 = vld [vmem:[%s1033_s9 + $0x158] sm:$0xff] }
  0x63   : > { %369 = vmatprep.subr.mxu0 %v300_v18  ;;  %v329_v61 = vld [vmem:[%s1033_s9 + $0x150] sm:$0xff]  ;;  %v328_v62 = vld [vmem:[%s1033_s9 + $0x148] sm:$0xff]  ;;  %v327_v0 = vld [vmem:[%s1033_s9 + $0x140] sm:$0xff] }
  0x64   : > { %370 = vmatpush1.msra.mxu0 %v299_v19  ;;  %v326_v1 = vld [vmem:[%s1033_s9 + $0x138] sm:$0xff]  ;;  %v325_v3 = vld [vmem:[%s1033_s9 + $0x130] sm:$0xff]  ;;  %v324_v4 = vld [vmem:[%s1033_s9 + $0x128] sm:$0xff] }
  0x65   : > { %371 = vmatprep.subr.mxu0 %v298_v20  ;;  %v323_v5 = vld [vmem:[%s1033_s9 + $0x120] sm:$0xff]  ;;  %v322_v7 = vld [vmem:[%s1033_s9 + $0x118] sm:$0xff]  ;;  %v321_v8 = vld [vmem:[%s1033_s9 + $0x110] sm:$0xff] }
  0x66   : > { %372 = vmatpush1.msra.mxu0 %v297_v21  ;;  %v320_v9 = vld [vmem:[%s1033_s9 + $0x108] sm:$0xff]  ;;  %v319_v10 = vld [vmem:[%s1033_s9 + $0x100] sm:$0xff] }
  0x67   : > { %373 = vmatprep.subr.mxu0 %v296_v22  ;;  %v422_v15 = vld [vmem:[%s239_s28] sm:$0x3] }
  0x68   : > { %374 = vmatpush1.msra.mxu0 %v295_v23  ;;  %v687_v43 = vpop.eup %686  ;;  %v427_v17 = vrot.slane %v422_v15, %v426_v14  ;;  %v431_v18 = vrot.slane %v422_v15, %v430_v16 }
  0x69   : > { %375 = vmatprep.subr.mxu0 %v294_v26  ;;  %v689_v45 = vpop.eup %688  ;;  %v280_v47 = vadd.f32 1.0, %v687_v43 }
  0x6a   : > { %376 = vmatpush1.msra.mxu0 %v293_v29  ;;  %v279_v51 = vadd.f32 1.0, %v689_v45 }
  0x6b   : > { %377 = vmatprep.subr.mxu0 %v292_v30  ;;  %690 = vrcp.f32 %v280_v47 }
  0x6c   : > { %378 = vmatpush1.msra.mxu0 %v291_v31  ;;  %692 = vrcp.f32 %v279_v51 }
  0x6d   : > { %379 = vmatprep.subr.mxu0 %v290_v32 }
  0x6e   : > { %380 = vmatpush1.msra.mxu0 %v289_v33 }
  0x6f   : > { %381 = vmatprep.subr.mxu0 %v288_v34 }
  0x70   : > { %382 = vmatpush1.msra.mxu0 %v287_v35 }
  0x71   : > { %383 = vmatprep.subr.mxu0 %v350_v36 }
  0x72   : > { %384 = vmatpush2.msra.mxu0 %v349_v37 }
  0x73   : > { %385 = vmatprep.subr.mxu0 %v348_v38 }
  0x74   : > { %386 = vmatpush2.msra.mxu0 %v347_v39 }
  0x75   : > { %387 = vmatprep.subr.mxu0 %v346_v40 }
  0x76   : > { %388 = vmatpush2.msra.mxu0 %v345_v41 }
  0x77   : > { %389 = vmatprep.subr.mxu0 %v344_v42 }
  0x78   : > { %390 = vmatpush2.msra.mxu0 %v343_v44  ;;  %v691_v63 = vpop.eup %690 }
  0x79   : > { %391 = vmatprep.subr.mxu0 %v342_v46  ;;  %v286_v2 = vmul.f32 %v691_v63, %v1063_v24  ;;  %v693_v6 = vpop.eup %692 }
  0x7a   : > { %392 = vmatpush2.msra.mxu0 %v341_v48  ;;  %v285_v11 = vmul.f32 %v693_v6, %v1065_v25 }
  0x7b   : > { %393 = vmatprep.subr.mxu0 %v340_v49  ;;  %415 = vmatprep.mubr.f32.mxu0 %v286_v2 }
  0x7c   : > { %394 = vmatpush2.msra.mxu0 %v339_v50 }
  0x7d   : > { %395 = vmatprep.subr.mxu0 %v338_v52 }
  0x7e   : > { %396 = vmatpush2.msra.mxu0 %v337_v53 }
  0x7f   : > { %397 = vmatprep.subr.mxu0 %v336_v54 }
  0x80   : > { %398 = vmatpush2.msra.mxu0 %v335_v55 }
  0x81   : > { %399 = vmatprep.subr.mxu0 %v334_v56 }
  0x82   : > { %400 = vmatpush2.msra.mxu0 %v333_v57 }
  0x83   : > { %401 = vmatprep.subr.mxu0 %v332_v58 }
  0x84   : > { %402 = vmatpush2.msra.mxu0 %v331_v59 }
  0x85   : > { %403 = vmatprep.subr.mxu0 %v330_v60 }
  0x86   : > { %404 = vmatpush2.msra.mxu0 %v329_v61 }
  0x87   : > { %405 = vmatprep.subr.mxu0 %v328_v62 }
  0x88   : > { %406 = vmatpush2.msra.mxu0 %v327_v0 }
  0x89   : > { %407 = vmatprep.subr.mxu0 %v326_v1 }
  0x8a   : > { %408 = vmatpush2.msra.mxu0 %v325_v3 }
  0x8b   : > { %409 = vmatprep.subr.mxu0 %v324_v4 }
  0x8c   : > { %410 = vmatpush2.msra.mxu0 %v323_v5 }
  0x8d   : > { %411 = vmatprep.subr.mxu0 %v322_v7 }
  0x8e   : > { %412 = vmatpush2.msra.mxu0 %v321_v8 }
  0x8f   : > { %413 = vmatprep.subr.mxu0 %v320_v9 }
  0x90   : > { %414 = vmatpush2.msra.mxu0 %v319_v10 }
  0x91   : > { %416 = vmatmul.mubr.f32.vlgmr.msra.gmra.mxu0 %v285_v11 }
 0x151   : > { %v417_v19 = vpop.f32.mrf.mxu0 }
 0x152   : > { %v434_v20 = vadd.f32 %v427_v17, %v417_v19 }
 0x153   : > { %v419_v21 = vpop.f32.mrf.mxu0 }
 0x154   : > { %436 = vst [vmem:[%s266_s10] sm:$0xff] %v434_v20  ;;  %v435_v22 = vadd.f32 %v431_v18, %v419_v21 }
 0x156   : > { %437 = vst [vmem:[%s266_s10 + $0x8] sm:$0xff] %v435_v22 }
 0x157   : > { %789 = shalt.err (!%p786_p2)
}
 0x158   : > { %s790_s5 = scalar_lea.hbm %s455_s21, 256  ;;  %s794_s8 = scalar_lea.hbm %s1155_s3, 768 }
 0x159   : > { %p791_p4 = scmp.ne.s32.totalorder %s455_s21, %s790_s5  ;;  %p795_p6 = scmp.lt.s32.totalorder %s455_s21, %s1155_s3 }
 0x15a   : > { %p796_p10 = scmp.lt.s32.totalorder %s794_s8, %s790_s5 }
 0x15b   : > { %p792_p9 = pnand %p791_p4, %p1170_p13 }
 0x15c   : > { %p797_p3 = por %p796_p10, %p795_p6 }
 0x15d   : > { %p793_p11 = pneg %p792_p9 }
 0x15f   : > { %p798_p8 = pnand %p797_p3, %p793_p11 }
 0x161   : > { %801 = shalt.err (!%p798_p8)
}
 0x162   : > { %613 = dma.vmem_to_hbm [thread:$0]  (%p1170_p13), %s458_s11, 256, %s455_s21, %s439_s30  }
 0x163 PF: > { %p633_p0 = scmp.ge.s32.totalorder %s860_s17, 2  ;;  %s469_s23 = sand.u32 1, %s840_s12  }
 0x164   : > { %p1171_p5 = scmp.ne.s32.totalorder %s1164_s26, 0  ;;  %s470_s28 = scalar_lea.sflag [#allocation4], %s469_s23 }
 0x166   : > { %p627_p12 = pnand %p633_p0, %p1171_p5 }
 0x168   : > { %p628_p7 = pneg %p627_p12 }
 0x16a   : > { %835 = dma.done.wait (%p628_p7), %s470_s28, 256  }
 0x16b   : > { %837 = vsyncadd (%p628_p7), %s470_s28, 4294967040  ;;  %s20_s17 = sadd.s32 1, %s860_s17   ;;  %s1172_s12 = smov %s844_s13 }
 0x16c   : > { %p17_p1 = scmp.ge.s32.totalorder %s20_s17, 5   ;;  %s1173_s13 = smov %s848_s14 }
 0x16d   : > { %s1174_s14 = smov %s936_s24  ;;  %s1175_s15 = smov %s856_s16 }
 0x16e   : > { %s1176_s16 = smov %s1178_s18  ;;  %19 = sbr.rel (!%p17_p1) target bundleno = 9 (0x9), region = 93 }
 0x173   :  { %475 = vsyncpa [#allocation3], 1 }
 0x174   :  { %477 = vsyncpa [#allocation3 + $0x1], 1 }
 0x175   :  { %478 = vsyncpa [#allocation6], 1 }
 0x176   :  { %480 = vsyncpa [#allocation6 + $0x1], 1 }
 0x177   :  { %481 = vsyncpa [#allocation4], 1 }
 0x178   :  { %483 = vsyncpa [#allocation4 + $0x1], 1 }

</bundles_post_ra>
